<compile_context>
chip_gen: v7x
topology: tpu7x:2x2x1
jax: 0.10.0
libtpu: 0.0.40
codegen_flags: <defaults>
</compile_context>

<pallas_src>
import functools

import jax
import jax.numpy as jnp
from jax.experimental import pallas as pl
from jax.experimental.pallas import tpu as pltpu


# ---------------------------------------------------------------------------
# Kernels
# ---------------------------------------------------------------------------
def _ch_decrease_kernel(x_ref, w_ref, b_ref, o_ref):
    """Full-C_in path: one MXU matmul (+ f32 bias) per folded batch."""
    # x: (nb, C_in, T)  w: (C_out, C_in)  b: (C_out, 1) f32  o: (nb, C_out, T)
    w = w_ref[...]
    b = b_ref[...]
    for i in range(x_ref.shape[0]):          # nb is small & trace-time static
        acc = jnp.dot(w, x_ref[i], preferred_element_type=jnp.float32)
        o_ref[i] = (acc + b).astype(o_ref.dtype)


def _ch_decrease_kernel_ksplit(x_ref, w_ref, b_ref, o_ref, acc_ref, *, num_k):
    """Large-C_in path: C_in reduction on the last grid axis (accumulator)."""
    k = pl.program_id(2)

    @pl.when(k == 0)
    def _init():
        acc_ref[...] = jnp.zeros_like(acc_ref)

    w = w_ref[...]
    for i in range(x_ref.shape[0]):
        acc_ref[i] = acc_ref[i] + jnp.dot(
            w, x_ref[i], preferred_element_type=jnp.float32)

    @pl.when(k == num_k - 1)
    def _finalize():
        b = b_ref[...]                       # (C_out, 1) f32
        o_ref[...] = (acc_ref[...] + b[None, :, :]).astype(o_ref.dtype)


# ---------------------------------------------------------------------------
# Block / VMEM sizing
# ---------------------------------------------------------------------------
def _vmem_params(budget_override=None):
    """Generation-aware (block budget, scoped vmem limit) in bytes."""
    try:
        cap = int(pltpu.get_tpu_info().vmem_capacity_bytes)
    except Exception:
        cap = 64 * 1024 * 1024               # conservative fallback (v7x per-TC)
    # ~40% of physical VMEM for double-buffered blocks, capped at 48 MiB even
    # on 128 MiB parts (v5e/v6e); on v7x (64 MiB) this is ~25 MiB.
    budget = min(int(cap * 0.40), 48 * 1024 * 1024)
    if budget_override is not None:
        budget = int(budget_override)
    limit = int(min(cap - (8 << 20), max(32 << 20, budget + (16 << 20))))
    return budget, limit


def _select_blocking(n, c_in, c_out, s, itemsize, budget):
    """Pick (batches per step, spatial tile, C_in tile) for the VMEM budget."""

    def max_lanes(k_tile):
        # resident weight/bias blocks (double-buffered) + per-lane block bytes
        fixed = 2 * c_out * k_tile * itemsize + 2 * c_out * 4
        per_lane = 2 * (k_tile + c_out) * itemsize       # x + out (double-buffered)
        if k_tile < c_in:
            per_lane += 4 * c_out                        # f32 accumulator scratch
        return max(0, (budget - fixed) // per_lane)

    k_tile = c_in
    lanes = max_lanes(c_in)
    target = min(s, 512)                     # keep >=512-wide lane-dense stores
    if lanes < target:
        # Split the channel reduction instead of shrinking the spatial tile.
        # Only exact splits (k_tile | c_in, multiple of 128) to keep the
        # reduction free of ragged/garbage K blocks.
        for cand in (8192, 4096, 2048, 1024, 512, 256, 128):
            if cand < c_in and c_in % cand == 0 and max_lanes(cand) >= target:
                k_tile = cand
                lanes = max_lanes(cand)
                break
    lanes = max(128, lanes)

    if s <= lanes:
        tile = s                             # full-extent spatial block (legal)
        nb = int(min(n, max(1, lanes // s), 32))
        while n % nb:                        # avoid ragged batch blocks
            nb -= 1
    else:
        tile = int((lanes // 128) * 128)     # lane-dense multiple of 128
        nb = 1
    return nb, tile, k_tile


# ---------------------------------------------------------------------------
# Public wrapper
# ---------------------------------------------------------------------------
@functools.partial(jax.jit, static_argnames=("vmem_budget_bytes",))
def ch_decrease(x_nchw, weight, bias, *, vmem_budget_bytes=None):
    """1x1 conv (PyTorch Conv2d semantics, NCHW).

    x_nchw : (N, C_in, H, W)
    weight : (C_out, C_in) or (C_out, C_in, 1, 1)
    bias   : (C_out,)
    returns: (N, C_out, H, W)
    """
    n, c_in, h, w = x_nchw.shape
    c_out = weight.shape[0]
    s = h * w

    # Free reshapes in the native NCHW layout — no transposes, no padding.
    x3 = x_nchw.reshape(n, c_in, s)                         # (N, C_in, S)
    w_mat = weight.reshape(c_out, c_in).astype(x3.dtype)    # (C_out, C_in)
    b_col = bias.reshape(c_out, 1).astype(jnp.float32)      # f32 bias (hoisted)

    itemsize = jnp.dtype(x3.dtype).itemsize
    budget, vmem_limit = _vmem_params(vmem_budget_bytes)
    nb, tile, k_tile = _select_blocking(n, c_in, c_out, s, itemsize, budget)
    num_k = c_in // k_tile

    if num_k == 1:
        grid = (n // nb, pl.cdiv(s, tile))
        in_specs = [
            pl.BlockSpec((nb, c_in, tile), lambda b, i: (b, 0, i)),
            pl.BlockSpec((c_out, c_in), lambda b, i: (0, 0)),
            pl.BlockSpec((c_out, 1), lambda b, i: (0, 0)),
        ]
        out_specs = pl.BlockSpec((nb, c_out, tile), lambda b, i: (b, 0, i))
        scratch_shapes = []
        kernel = _ch_decrease_kernel
        semantics = ("parallel", "parallel")
    else:
        grid = (n // nb, pl.cdiv(s, tile), num_k)
        in_specs = [
            pl.BlockSpec((nb, k_tile, tile), lambda b, i, k: (b, k, i)),
            pl.BlockSpec((c_out, k_tile), lambda b, i, k: (0, k)),
            pl.BlockSpec((c_out, 1), lambda b, i, k: (0, 0)),
        ]
        out_specs = pl.BlockSpec((nb, c_out, tile), lambda b, i, k: (b, 0, i))
        scratch_shapes = [pltpu.VMEM((nb, c_out, tile), jnp.float32)]
        kernel = functools.partial(_ch_decrease_kernel_ksplit, num_k=num_k)
        semantics = ("parallel", "parallel", "arbitrary")

    out = pl.pallas_call(
        kernel,
        out_shape=jax.ShapeDtypeStruct((n, c_out, s), x3.dtype),
        grid_spec=pltpu.PrefetchScalarGridSpec(
            num_scalar_prefetch=0,
            grid=grid,
            in_specs=in_specs,
            out_specs=out_specs,
            scratch_shapes=scratch_shapes,
        ),
        compiler_params=pltpu.CompilerParams(
            dimension_semantics=semantics,
            vmem_limit_bytes=vmem_limit,
        ),
    )(x3, w_mat, b_col)

    return out.reshape(n, c_out, h, w)


def init_ch_decrease_params(key, inplanes, times, dtype=jnp.float32):
    """Deterministic init matching nn.Conv2d(inplanes, inplanes//times, 1) shapes."""
    outplanes = inplanes // times
    k_w, k_b = jax.random.split(key)
    fan_in = inplanes * 1 * 1
    bound = 1.0 / (fan_in ** 0.5)  # PyTorch default conv init range
    weight = jax.random.uniform(
        k_w, (outplanes, inplanes), dtype=dtype, minval=-bound, maxval=bound
    )
    bias = jax.random.uniform(
        k_b, (outplanes,), dtype=dtype, minval=-bound, maxval=bound
    )
    return weight, bias


if __name__ == "__main__":
    key = jax.random.PRNGKey(0)
    k_x, k_p, k_x2, k_p2 = jax.random.split(key, 4)

    # Primary check: small shapes consistent with the module (inplanes=8, times=2).
    batch, inplanes, times, spatial = 2, 8, 2, 16
    x = jax.random.normal(k_x, (batch, inplanes, spatial, spatial), dtype=jnp.float32)
    weight, bias = init_ch_decrease_params(k_p, inplanes, times)
    out = jax.block_until_ready(ch_decrease(x, weight, bias))
    ref = jnp.einsum("nchw,oc->nohw", x, weight) + bias[None, :, None, None]
    assert out.shape == (batch, inplanes // times, spatial, spatial)
    assert jnp.allclose(out, ref, atol=1e-5, rtol=1e-5)

    # Secondary check: force the channel-reduction (K-axis accumulator) path
    # with an artificially small block budget (exercises the large-C_in path).
    b2, c2, t2, sp2 = 1, 512, 4, 32
    x2 = jax.random.normal(k_x2, (b2, c2, sp2, sp2), dtype=jnp.float32)
    w2, bias2 = init_ch_decrease_params(k_p2, c2, t2)
    out2 = jax.block_until_ready(
        ch_decrease(x2, w2, bias2, vmem_budget_bytes=2 * 1024 * 1024))
    ref2 = jnp.einsum("nchw,oc->nohw", x2, w2) + bias2[None, :, None, None]
    assert out2.shape == (b2, c2 // t2, sp2, sp2)
    assert jnp.allclose(out2, ref2, atol=1e-4, rtol=1e-4)

    print("KERNEL_OK")
</pallas_src>

<mosaic_0001>
module attributes {stable_mosaic.version = 11 : i64} {
  func.func @_ch_decrease_kernel(%arg0: i32, %arg1: i32, %arg2: memref<2x8x256xf32, #tpu.memory_space<vmem>>, %arg3: memref<4x8xf32, #tpu.memory_space<vmem>>, %arg4: memref<4x1xf32, #tpu.memory_space<vmem>>, %arg5: memref<2x4x256xf32, #tpu.memory_space<vmem>>) attributes {dimension_semantics = [#tpu.dimension_semantics<parallel>, #tpu.dimension_semantics<parallel>], iteration_bounds = array<i64: 1, 1>, scalar_prefetch = 0 : i64, scratch_operands = 0 : i64, tpu.core_type = #tpu.core_type<tc>, window_params = [{transform_indices = @transform_0, window_bounds = array<i64: 2, 8, 256>}, {pipeline_mode = #tpu.pipeline_mode<synchronous>, transform_indices = @transform_1, window_bounds = array<i64: 4, 8>}, {pipeline_mode = #tpu.pipeline_mode<synchronous>, transform_indices = @transform_2, window_bounds = array<i64: 4, 1>}, {transform_indices = @transform_3, window_bounds = array<i64: 2, 4, 256>}]} {
    %c0 = arith.constant 0 : index
    %c0_0 = arith.constant 0 : index
    %0 = vector.load %arg3[%c0, %c0_0] : memref<4x8xf32, #tpu.memory_space<vmem>>, vector<4x8xf32>
    %c0_1 = arith.constant 0 : index
    %c0_2 = arith.constant 0 : index
    %1 = vector.load %arg4[%c0_1, %c0_2] : memref<4x1xf32, #tpu.memory_space<vmem>>, vector<4x1xf32>
    %c0_3 = arith.constant 0 : index
    %c0_4 = arith.constant 0 : index
    %c0_5 = arith.constant 0 : index
    %2 = vector.load %arg2[%c0_3, %c0_4, %c0_5] : memref<2x8x256xf32, #tpu.memory_space<vmem>>, vector<1x8x256xf32>
    %3 = vector.shape_cast %2 : vector<1x8x256xf32> to vector<8x256xf32>
    %cst = arith.constant dense<0.000000e+00> : vector<4x256xf32>
    %4 = tpu.matmul %0, %3, %cst {dimension_numbers = #tpu.dot_dimension_numbers<[1], [0], [0], [1], [0, 0, 1, 1], [], []>} : vector<4x8xf32>, vector<8x256xf32>, vector<4x256xf32> -> vector<4x256xf32>
    %5 = vector.broadcast %1 : vector<4x1xf32> to vector<4x256xf32>
    %6 = arith.addf %4, %5 : vector<4x256xf32>
    %c0_6 = arith.constant 0 : index
    %c0_7 = arith.constant 0 : index
    %c0_8 = arith.constant 0 : index
    %7 = vector.load %arg5[%c0_6, %c0_7, %c0_8] : memref<2x4x256xf32, #tpu.memory_space<vmem>>, vector<1x4x256xf32>
    %8 = vector.shape_cast %7 : vector<1x4x256xf32> to vector<4x256xf32>
    %9 = vector.shape_cast %6 : vector<4x256xf32> to vector<1x4x256xf32>
    tpu.vector_store %arg5[%c0_6, %c0_7, %c0_8], %9 {strides = array<i32>} : memref<2x4x256xf32, #tpu.memory_space<vmem>>, vector<1x4x256xf32>,
    %c1 = arith.constant 1 : index
    %c0_9 = arith.constant 0 : index
    %c0_10 = arith.constant 0 : index
    %10 = vector.load %arg2[%c1, %c0_9, %c0_10] : memref<2x8x256xf32, #tpu.memory_space<vmem>>, vector<1x8x256xf32>
    %11 = vector.shape_cast %10 : vector<1x8x256xf32> to vector<8x256xf32>
    %cst_11 = arith.constant dense<0.000000e+00> : vector<4x256xf32>
    %12 = tpu.matmul %0, %11, %cst_11 {dimension_numbers = #tpu.dot_dimension_numbers<[1], [0], [0], [1], [0, 0, 1, 1], [], []>} : vector<4x8xf32>, vector<8x256xf32>, vector<4x256xf32> -> vector<4x256xf32>
    %13 = vector.broadcast %1 : vector<4x1xf32> to vector<4x256xf32>
    %14 = arith.addf %12, %13 : vector<4x256xf32>
    %c1_12 = arith.constant 1 : index
    %c0_13 = arith.constant 0 : index
    %c0_14 = arith.constant 0 : index
    %15 = vector.load %arg5[%c1_12, %c0_13, %c0_14] : memref<2x4x256xf32, #tpu.memory_space<vmem>>, vector<1x4x256xf32>
    %16 = vector.shape_cast %15 : vector<1x4x256xf32> to vector<4x256xf32>
    %17 = vector.shape_cast %14 : vector<4x256xf32> to vector<1x4x256xf32>
    tpu.vector_store %arg5[%c1_12, %c0_13, %c0_14], %17 {strides = array<i32>} : memref<2x4x256xf32, #tpu.memory_space<vmem>>, vector<1x4x256xf32>,
    return
  }
  func.func @transform_0(%arg0: i32, %arg1: i32) -> (i32, i32, i32) {
    %c0_i32 = arith.constant 0 : i32
    %c0_i32_0 = arith.constant 0 : i32
    return %arg0, %c0_i32, %arg1 : i32, i32, i32
  }
  func.func @transform_1(%arg0: i32, %arg1: i32) -> (i32, i32) {
    %c0_i32 = arith.constant 0 : i32
    %c0_i32_0 = arith.constant 0 : i32
    %c0_i32_1 = arith.constant 0 : i32
    return %c0_i32, %c0_i32_0 : i32, i32
  }
  func.func @transform_2(%arg0: i32, %arg1: i32) -> (i32, i32) {
    %c0_i32 = arith.constant 0 : i32
    %c0_i32_0 = arith.constant 0 : i32
    %c0_i32_1 = arith.constant 0 : i32
    return %c0_i32, %c0_i32_0 : i32, i32
  }
  func.func @transform_3(%arg0: i32, %arg1: i32) -> (i32, i32, i32) {
    %c0_i32 = arith.constant 0 : i32
    %c0_i32_0 = arith.constant 0 : i32
    return %arg0, %c0_i32, %arg1 : i32, i32, i32
  }
}

</mosaic_0001>

<bundles_post_ra>
// kernel: ch_decrease.1
= control target key start
LH: loop header
LB: loop body
LE: loop exit
PB: predicated region body
PF: predicated region fallthrough
CT: control target
= control target key end

     0   :  { %v195_v3 = vmov 0.0   ;;  %vm23_vm0 = vcmask 64512   ;;  %v196_v7 = vmov 0   ;;  %s241_s0 = inlined_call_operand.vmem [shape: f32[2,8,256], index: 0, kind: input, shape index: {}]   ;;  %s242_s1 = inlined_call_operand.vmem [shape: f32[4,8], index: 1, kind: input, shape index: {}]   ;;  %s243_s2 = inlined_call_operand.vmem [shape: f32[4,1], index: 2, kind: input, shape index: {}]   ;;  %s244_s3 = inlined_call_operand.vmem [shape: f32[2,4,256], index: 3, kind: output, shape index: {}]  }
   0x1   :  { %v17_v0 = vld [vmem:[%s241_s0 + $0x8] sm:$0xff]  ;;  %v189_v1 = vld [vmem:[%s241_s0 + $0x18] sm:$0xff]  ;;  %v16_v2 = vld [vmem:[%s241_s0] sm:$0xff]  ;;  %91 = vmatprep.mubr.f32.mxu0 %v195_v3  ;;  %170 = vmatprep.mubr.f32.mxu1 %v195_v3 }
   0x2   :  { %27 = vmatprep.subr.mxu0 %v17_v0  ;;  %106 = vmatprep.subr.mxu1 %v189_v1  ;;  %v188_v4 = vld [vmem:[%s241_s0 + $0x10] sm:$0xff]  ;;  %v14_v5 = vld [vmem:[%s242_s1] sm:$0xf] }
   0x3   :  { %28 = vmatpush1.msra.mxu0 %v16_v2  ;;  %107 = vmatpush1.msra.mxu1 %v188_v4  ;;  %v15_v6 = vld [vmem:[%s243_s2] sm:$0xf] }
   0x4   :  { %187 = vmatmul.mubr.msk.f32.vlgmr.msra.gmra.mrb[0].mxu0 %vm23_vm0, %v14_v5  ;;  %190 = vmatmul.mubr.msk.f32.vlgmr.msra.gmra.mrb[0].mxu1 %vm23_vm0, %v14_v5 }
   0x5   :  { %194 = vset.pattern.permute.xlu0 %v196_v7 }
   0x6   :  { %20 = vperm.xlu0 %194, %v15_v6  }
  0x85   :  { %v21_v8 = vpop.permute.xlu0 %20 }
  0xd7   :  { %v93_v9 = vpop.f32.mrb[0].mxu0  ;;  %v172_v10 = vpop.f32.mrb[0].mxu1 }
  0xd8   :  { %v94_v11 = vadd.f32 %v93_v9, %v21_v8  ;;  %v173_v12 = vadd.f32 %v172_v10, %v21_v8  ;;  %v95_v13 = vpop.f32.mrb[1].mxu0  ;;  %v174_v14 = vpop.f32.mrb[1].mxu1 }
  0xd9   :  { %v96_v15 = vadd.f32 %v95_v13, %v21_v8  ;;  %v175_v16 = vadd.f32 %v174_v14, %v21_v8 }
  0xdb   :  { %v100_v17 = vcombine.low %v94_v11, %v96_v15  ;;  %v179_v18 = vcombine.low %v173_v12, %v175_v16 }
  0xdd   :  { %102 = vst [vmem:[%s244_s3] sm:$0xff] %v100_v17  ;;  %191 = vst [vmem:[%s244_s3 + $0x8] sm:$0xff] %v179_v18 }

</bundles_post_ra>
